<compile_context>
chip_gen: v7x
topology: tpu7x:2x2x1
jax: 0.10.0
libtpu: 0.0.40
codegen_flags: <defaults>
</compile_context>

<pallas_src>
import jax
import jax.numpy as jnp
import numpy as np
from jax.experimental import pallas as pl
from jax.experimental.pallas import tpu as pltpu

PF = 12                  # predictive_factor
TARGET_TILE_B = 8192     # batch tile on the lane axis; sweep 8192..16384


def _choose_tile_b(batch, target=TARGET_TILE_B):
    """Lane-aligned (x128) batch tile, capped at ~ceil(B/2) so large batches
    produce >= 2 grid steps (v7x megacore sharding via "parallel")."""
    half = -(-batch // 2)                        # ceil(B/2)
    half_aligned = ((half + 127) // 128) * 128
    return max(128, min(target, half_aligned))


# --------------------------------------------------------------------------
# Pallas kernel: everything after the embedding gathers, in [feat, batch] form.
# --------------------------------------------------------------------------
def _ncf_kernel(u_ref, i_ref,
                w1u_ref, w1i_ref, b1_ref,
                w2_ref, b2_ref, w3_ref, b3_ref, w4_ref, b4_ref,
                wg_ref, wm_ref, bout_ref,
                out_ref):
    f32 = jnp.float32
    u = u_ref[...]                       # [24, TB]  rows: mlp_user | gmf_user
    it = i_ref[...]                      # [24, TB]  rows: mlp_item | gmf_item

    # GMF branch: elementwise product on full lanes.
    gmf = u[PF:, :] * it[PF:, :]         # [12, TB]

    # MLP layer 1 with user/item-split weights (no in-kernel sublane concat):
    #   W1 @ cat(mlp_u, mlp_i) == W1u @ mlp_u + W1i @ mlp_i
    h = jnp.maximum(
        jnp.dot(w1u_ref[...], u[:PF, :], preferred_element_type=f32)
        + jnp.dot(w1i_ref[...], it[:PF, :], preferred_element_type=f32)
        + b1_ref[...], 0.0)                                                                    # [48, TB]
    h = jnp.maximum(jnp.dot(w2_ref[...], h, preferred_element_type=f32) + b2_ref[...], 0.0)    # [24, TB]
    h = jnp.maximum(jnp.dot(w3_ref[...], h, preferred_element_type=f32) + b3_ref[...], 0.0)    # [12, TB]
    h = jnp.maximum(jnp.dot(w4_ref[...], h, preferred_element_type=f32) + b4_ref[...], 0.0)    # [ 6, TB]

    # Joined head: cat([gmf, h]) @ W_join.T  ==  Wg @ gmf + Wm @ h   -> [1, TB]
    logits = (jnp.dot(wg_ref[...], gmf, preferred_element_type=f32)
              + jnp.dot(wm_ref[...], h, preferred_element_type=f32)
              + bout_ref[...])

    # Sigmoid (exp on EUP); exact form kept for tight f32 test tolerance.
    out_ref[...] = 1.0 / (1.0 + jnp.exp(-logits))   # lane-dense [1, TB] store


# --------------------------------------------------------------------------
# Parameter construction (deterministic, kernel-ready layout).
# --------------------------------------------------------------------------
def _xavier_uniform(key, shape):
    fan_out, fan_in = shape
    bound = float(np.sqrt(6.0 / (fan_in + fan_out)))
    return jax.random.uniform(key, shape, jnp.float32, -bound, bound)


def _linear_bias(key, fan_in, n):
    bound = 1.0 / float(np.sqrt(fan_in))
    return jax.random.uniform(key, (n, 1), jnp.float32, -bound, bound)   # column vector


def init_ncf_params(key, user_num, item_num, pf=PF):
    ks = jax.random.split(key, 16)
    p = {}
    # Embedding tables (xavier, as in initialize_weights()), row-major for the ref.
    p["mlp_user_emb"] = _xavier_uniform(ks[0], (user_num, pf))
    p["mlp_item_emb"] = _xavier_uniform(ks[1], (item_num, pf))
    p["gmf_user_emb"] = _xavier_uniform(ks[2], (user_num, pf))
    p["gmf_item_emb"] = _xavier_uniform(ks[3], (item_num, pf))
    # Fused feature-major tables for the kernel path: rows 0..11 = mlp, 12..23 = gmf.
    p["user_table"] = jnp.concatenate([p["mlp_user_emb"].T, p["gmf_user_emb"].T], axis=0)  # [24, U]
    p["item_table"] = jnp.concatenate([p["mlp_item_emb"].T, p["gmf_item_emb"].T], axis=0)  # [24, I]
    # MLP Linears kept in torch [out, in] layout (kernel computes W @ x).
    p["w1"] = _xavier_uniform(ks[4], (48, 2 * pf)); p["b1"] = _linear_bias(ks[5], 2 * pf, 48)
    p["w2"] = _xavier_uniform(ks[6], (24, 48));     p["b2"] = _linear_bias(ks[7], 48, 24)
    p["w3"] = _xavier_uniform(ks[8], (12, 24));     p["b3"] = _linear_bias(ks[9], 24, 12)
    p["w4"] = _xavier_uniform(ks[10], (6, 12));     p["b4"] = _linear_bias(ks[11], 12, 6)
    # Pre-split layer-1 weight so the kernel never concatenates along sublanes.
    p["w1u"] = p["w1"][:, :pf]
    p["w1i"] = p["w1"][:, pf:]
    # Heads: join_output_weights() -> W = cat(0.5*gmf_out_w, 0.5*mlp_out_w); bias from output_logits.
    gmf_out_w = _xavier_uniform(ks[12], (1, pf))    # gmf_out.weight (bias unused in forward)
    mlp_out_w = _xavier_uniform(ks[13], (1, 6))     # mlp_out.weight (bias unused in forward)
    out_bias = _linear_bias(ks[14], pf, 1)          # output_logits.bias (Linear(pf,1) -> fan_in=pf)
    blend = 0.5
    p["wout_gmf"] = blend * gmf_out_w               # (1, 12), pre-scaled
    p["wout_mlp"] = (1.0 - blend) * mlp_out_w       # (1, 6),  pre-scaled
    p["bout"] = out_bias                            # (1, 1)
    return p


# --------------------------------------------------------------------------
# Wrapper: two feature-major gathers in JAX, hot path in Pallas.
# --------------------------------------------------------------------------
@jax.jit
def ncf_forward(x, params):
    user_id = x[:, 0].astype(jnp.int32)
    item_id = x[:, 1].astype(jnp.int32)
    B = user_id.shape[0]

    tile_b = _choose_tile_b(B)
    n_tiles = pl.cdiv(B, tile_b)
    Bp = n_tiles * tile_b
    if Bp != B:
        # Pad the cheap int32 index vectors (index 0 is always valid), NOT the
        # gathered f32 slab -> no extra HBM pass over the dominant stream.
        # Padded columns flow through and are discarded by the final slice.
        user_id = jnp.pad(user_id, (0, Bp - B))
        item_id = jnp.pad(item_id, (0, Bp - B))

    # Feature-major fused tables: one gather per side lands directly in the
    # kernel's [feat, batch] layout (no concat / transpose / repack pass).
    u_slab = jnp.take(params["user_table"], user_id, axis=1)   # [24, Bp]
    i_slab = jnp.take(params["item_table"], item_id, axis=1)   # [24, Bp]

    weight_args = (
        params["w1u"], params["w1i"], params["b1"],
        params["w2"], params["b2"], params["w3"], params["b3"],
        params["w4"], params["b4"],
        params["wout_gmf"], params["wout_mlp"], params["bout"],
    )

    def const_spec(a):
        # Whole array, same block every grid step -> DMA'd once, VMEM-resident.
        return pl.BlockSpec(a.shape, lambda i: (0, 0))

    slab_spec = pl.BlockSpec((2 * PF, tile_b), lambda i: (0, i))

    out = pl.pallas_call(
        _ncf_kernel,
        grid=(n_tiles,),
        out_shape=jax.ShapeDtypeStruct((1, Bp), jnp.float32),
        in_specs=[slab_spec, slab_spec] + [const_spec(a) for a in weight_args],
        out_specs=pl.BlockSpec((1, tile_b), lambda i: (0, i)),
        compiler_params=pltpu.CompilerParams(
            dimension_semantics=("parallel",),       # megacore batch sharding on v7x
            vmem_limit_bytes=32 * 1024 * 1024),      # ~3 MiB/step even at tile_b=8192
    )(u_slab, i_slab, *weight_args)

    return out[0, :B]


# --------------------------------------------------------------------------
# Pure-JAX reference for correctness (mirrors the torch forward).
# --------------------------------------------------------------------------
def ncf_forward_ref(x, p):
    user_id, item_id = x[:, 0], x[:, 1]
    gmf = p["gmf_user_emb"][user_id] * p["gmf_item_emb"][item_id]
    h = jnp.concatenate([p["mlp_user_emb"][user_id], p["mlp_item_emb"][item_id]], axis=1)
    h = jax.nn.relu(h @ p["w1"].T + p["b1"][:, 0])
    h = jax.nn.relu(h @ p["w2"].T + p["b2"][:, 0])
    h = jax.nn.relu(h @ p["w3"].T + p["b3"][:, 0])
    h = jax.nn.relu(h @ p["w4"].T + p["b4"][:, 0])
    concat = jnp.concatenate([gmf, h], axis=1)
    w_join = jnp.concatenate([p["wout_gmf"], p["wout_mlp"]], axis=1)   # (1, 18)
    logits = concat @ w_join.T + p["bout"][:, 0]
    return jax.nn.sigmoid(logits).reshape(-1)


if __name__ == "__main__":
    user_num, item_num, batch = 32, 64, 8
    key = jax.random.PRNGKey(0)
    k_params, k_u, k_i = jax.random.split(key, 3)

    params = init_ncf_params(k_params, user_num, item_num)

    users = jax.random.randint(k_u, (batch, 1), 0, user_num, dtype=jnp.int32)
    items = jax.random.randint(k_i, (batch, 1), 0, item_num, dtype=jnp.int32)
    x = jnp.concatenate([users, items], axis=1)          # [B, 2] int32, like the torch input

    out = jax.block_until_ready(ncf_forward(x, params))

    ref = ncf_forward_ref(x, params)
    np.testing.assert_allclose(np.asarray(out), np.asarray(ref), rtol=1e-5, atol=1e-5)

    print("KERNEL_OK")
</pallas_src>

<mosaic_0001>
module attributes {stable_mosaic.version = 11 : i64} {
  func.func @_ncf_kernel(%arg0: i32, %arg1: memref<24x128xf32, #tpu.memory_space<vmem>>, %arg2: memref<24x128xf32, #tpu.memory_space<vmem>>, %arg3: memref<48x12xf32, #tpu.memory_space<vmem>>, %arg4: memref<48x12xf32, #tpu.memory_space<vmem>>, %arg5: memref<48x1xf32, #tpu.memory_space<vmem>>, %arg6: memref<24x48xf32, #tpu.memory_space<vmem>>, %arg7: memref<24x1xf32, #tpu.memory_space<vmem>>, %arg8: memref<12x24xf32, #tpu.memory_space<vmem>>, %arg9: memref<12x1xf32, #tpu.memory_space<vmem>>, %arg10: memref<6x12xf32, #tpu.memory_space<vmem>>, %arg11: memref<6x1xf32, #tpu.memory_space<vmem>>, %arg12: memref<1x12xf32, #tpu.memory_space<vmem>>, %arg13: memref<1x6xf32, #tpu.memory_space<vmem>>, %arg14: memref<1x1xf32, #tpu.memory_space<vmem>>, %arg15: memref<1x128xf32, #tpu.memory_space<vmem>>) attributes {dimension_semantics = [#tpu.dimension_semantics<parallel>], iteration_bounds = array<i64: 1>, scalar_prefetch = 0 : i64, scratch_operands = 0 : i64, tpu.core_type = #tpu.core_type<tc>, window_params = [{transform_indices = @transform_0, window_bounds = array<i64: 24, 128>}, {transform_indices = @transform_1, window_bounds = array<i64: 24, 128>}, {pipeline_mode = #tpu.pipeline_mode<synchronous>, transform_indices = @transform_2, window_bounds = array<i64: 48, 12>}, {pipeline_mode = #tpu.pipeline_mode<synchronous>, transform_indices = @transform_3, window_bounds = array<i64: 48, 12>}, {pipeline_mode = #tpu.pipeline_mode<synchronous>, transform_indices = @transform_4, window_bounds = array<i64: 48, 1>}, {pipeline_mode = #tpu.pipeline_mode<synchronous>, transform_indices = @transform_5, window_bounds = array<i64: 24, 48>}, {pipeline_mode = #tpu.pipeline_mode<synchronous>, transform_indices = @transform_6, window_bounds = array<i64: 24, 1>}, {pipeline_mode = #tpu.pipeline_mode<synchronous>, transform_indices = @transform_7, window_bounds = array<i64: 12, 24>}, {pipeline_mode = #tpu.pipeline_mode<synchronous>, transform_indices = @transform_8, window_bounds = array<i64: 12, 1>}, {pipeline_mode = #tpu.pipeline_mode<synchronous>, transform_indices = @transform_9, window_bounds = array<i64: 6, 12>}, {pipeline_mode = #tpu.pipeline_mode<synchronous>, transform_indices = @transform_10, window_bounds = array<i64: 6, 1>}, {pipeline_mode = #tpu.pipeline_mode<synchronous>, transform_indices = @transform_11, window_bounds = array<i64: 1, 12>}, {pipeline_mode = #tpu.pipeline_mode<synchronous>, transform_indices = @transform_12, window_bounds = array<i64: 1, 6>}, {pipeline_mode = #tpu.pipeline_mode<synchronous>, transform_indices = @transform_13, window_bounds = array<i64: 1, 1>}, {transform_indices = @transform_14, window_bounds = array<i64: 1, 128>}]} {
    %c0 = arith.constant 0 : index
    %c0_0 = arith.constant 0 : index
    %0 = vector.load %arg1[%c0, %c0_0] : memref<24x128xf32, #tpu.memory_space<vmem>>, vector<24x128xf32>
    %c0_1 = arith.constant 0 : index
    %c0_2 = arith.constant 0 : index
    %1 = vector.load %arg2[%c0_1, %c0_2] : memref<24x128xf32, #tpu.memory_space<vmem>>, vector<24x128xf32>
    %2 = vector.extract_strided_slice %0 {offsets = [12, 0], sizes = [12, 128], strides = [1, 1]} : vector<24x128xf32> to vector<12x128xf32>
    %3 = vector.extract_strided_slice %1 {offsets = [12, 0], sizes = [12, 128], strides = [1, 1]} : vector<24x128xf32> to vector<12x128xf32>
    %4 = arith.mulf %2, %3 : vector<12x128xf32>
    %c0_3 = arith.constant 0 : index
    %c0_4 = arith.constant 0 : index
    %5 = vector.load %arg3[%c0_3, %c0_4] : memref<48x12xf32, #tpu.memory_space<vmem>>, vector<48x12xf32>
    %6 = vector.extract_strided_slice %0 {offsets = [0, 0], sizes = [12, 128], strides = [1, 1]} : vector<24x128xf32> to vector<12x128xf32>
    %cst = arith.constant dense<0.000000e+00> : vector<48x128xf32>
    %7 = tpu.matmul %5, %6, %cst {dimension_numbers = #tpu.dot_dimension_numbers<[1], [0], [0], [1], [0, 0, 1, 1], [], []>} : vector<48x12xf32>, vector<12x128xf32>, vector<48x128xf32> -> vector<48x128xf32>
    %c0_5 = arith.constant 0 : index
    %c0_6 = arith.constant 0 : index
    %8 = vector.load %arg4[%c0_5, %c0_6] : memref<48x12xf32, #tpu.memory_space<vmem>>, vector<48x12xf32>
    %9 = vector.extract_strided_slice %1 {offsets = [0, 0], sizes = [12, 128], strides = [1, 1]} : vector<24x128xf32> to vector<12x128xf32>
    %cst_7 = arith.constant dense<0.000000e+00> : vector<48x128xf32>
    %10 = tpu.matmul %8, %9, %cst_7 {dimension_numbers = #tpu.dot_dimension_numbers<[1], [0], [0], [1], [0, 0, 1, 1], [], []>} : vector<48x12xf32>, vector<12x128xf32>, vector<48x128xf32> -> vector<48x128xf32>
    %11 = arith.addf %7, %10 : vector<48x128xf32>
    %c0_8 = arith.constant 0 : index
    %c0_9 = arith.constant 0 : index
    %12 = vector.load %arg5[%c0_8, %c0_9] : memref<48x1xf32, #tpu.memory_space<vmem>>, vector<48x1xf32>
    %13 = vector.broadcast %12 : vector<48x1xf32> to vector<48x128xf32>
    %14 = arith.addf %11, %13 : vector<48x128xf32>
    %cst_10 = arith.constant 0.000000e+00 : f32
    %15 = vector.broadcast %cst_10 : f32 to vector<48x128xf32>
    %16 = arith.maximumf %14, %15 : vector<48x128xf32>
    %c0_11 = arith.constant 0 : index
    %c0_12 = arith.constant 0 : index
    %17 = vector.load %arg6[%c0_11, %c0_12] : memref<24x48xf32, #tpu.memory_space<vmem>>, vector<24x48xf32>
    %cst_13 = arith.constant dense<0.000000e+00> : vector<24x128xf32>
    %18 = tpu.matmul %17, %16, %cst_13 {dimension_numbers = #tpu.dot_dimension_numbers<[1], [0], [0], [1], [0, 0, 1, 1], [], []>} : vector<24x48xf32>, vector<48x128xf32>, vector<24x128xf32> -> vector<24x128xf32>
    %c0_14 = arith.constant 0 : index
    %c0_15 = arith.constant 0 : index
    %19 = vector.load %arg7[%c0_14, %c0_15] : memref<24x1xf32, #tpu.memory_space<vmem>>, vector<24x1xf32>
    %20 = vector.broadcast %19 : vector<24x1xf32> to vector<24x128xf32>
    %21 = arith.addf %18, %20 : vector<24x128xf32>
    %cst_16 = arith.constant 0.000000e+00 : f32
    %22 = vector.broadcast %cst_16 : f32 to vector<24x128xf32>
    %23 = arith.maximumf %21, %22 : vector<24x128xf32>
    %c0_17 = arith.constant 0 : index
    %c0_18 = arith.constant 0 : index
    %24 = vector.load %arg8[%c0_17, %c0_18] : memref<12x24xf32, #tpu.memory_space<vmem>>, vector<12x24xf32>
    %cst_19 = arith.constant dense<0.000000e+00> : vector<12x128xf32>
    %25 = tpu.matmul %24, %23, %cst_19 {dimension_numbers = #tpu.dot_dimension_numbers<[1], [0], [0], [1], [0, 0, 1, 1], [], []>} : vector<12x24xf32>, vector<24x128xf32>, vector<12x128xf32> -> vector<12x128xf32>
    %c0_20 = arith.constant 0 : index
    %c0_21 = arith.constant 0 : index
    %26 = vector.load %arg9[%c0_20, %c0_21] : memref<12x1xf32, #tpu.memory_space<vmem>>, vector<12x1xf32>
    %27 = vector.broadcast %26 : vector<12x1xf32> to vector<12x128xf32>
    %28 = arith.addf %25, %27 : vector<12x128xf32>
    %cst_22 = arith.constant 0.000000e+00 : f32
    %29 = vector.broadcast %cst_22 : f32 to vector<12x128xf32>
    %30 = arith.maximumf %28, %29 : vector<12x128xf32>
    %c0_23 = arith.constant 0 : index
    %c0_24 = arith.constant 0 : index
    %31 = vector.load %arg10[%c0_23, %c0_24] : memref<6x12xf32, #tpu.memory_space<vmem>>, vector<6x12xf32>
    %cst_25 = arith.constant dense<0.000000e+00> : vector<6x128xf32>
    %32 = tpu.matmul %31, %30, %cst_25 {dimension_numbers = #tpu.dot_dimension_numbers<[1], [0], [0], [1], [0, 0, 1, 1], [], []>} : vector<6x12xf32>, vector<12x128xf32>, vector<6x128xf32> -> vector<6x128xf32>
    %c0_26 = arith.constant 0 : index
    %c0_27 = arith.constant 0 : index
    %33 = vector.load %arg11[%c0_26, %c0_27] : memref<6x1xf32, #tpu.memory_space<vmem>>, vector<6x1xf32>
    %34 = vector.broadcast %33 : vector<6x1xf32> to vector<6x128xf32>
    %35 = arith.addf %32, %34 : vector<6x128xf32>
    %cst_28 = arith.constant 0.000000e+00 : f32
    %36 = vector.broadcast %cst_28 : f32 to vector<6x128xf32>
    %37 = arith.maximumf %35, %36 : vector<6x128xf32>
    %c0_29 = arith.constant 0 : index
    %c0_30 = arith.constant 0 : index
    %38 = vector.load %arg12[%c0_29, %c0_30] : memref<1x12xf32, #tpu.memory_space<vmem>>, vector<1x12xf32>
    %cst_31 = arith.constant dense<0.000000e+00> : vector<1x128xf32>
    %39 = tpu.matmul %38, %4, %cst_31 {dimension_numbers = #tpu.dot_dimension_numbers<[1], [0], [0], [1], [0, 0, 1, 1], [], []>} : vector<1x12xf32>, vector<12x128xf32>, vector<1x128xf32> -> vector<1x128xf32>
    %c0_32 = arith.constant 0 : index
    %c0_33 = arith.constant 0 : index
    %40 = vector.load %arg13[%c0_32, %c0_33] : memref<1x6xf32, #tpu.memory_space<vmem>>, vector<1x6xf32>
    %cst_34 = arith.constant dense<0.000000e+00> : vector<1x128xf32>
    %41 = tpu.matmul %40, %37, %cst_34 {dimension_numbers = #tpu.dot_dimension_numbers<[1], [0], [0], [1], [0, 0, 1, 1], [], []>} : vector<1x6xf32>, vector<6x128xf32>, vector<1x128xf32> -> vector<1x128xf32>
    %42 = arith.addf %39, %41 : vector<1x128xf32>
    %c0_35 = arith.constant 0 : index
    %c0_36 = arith.constant 0 : index
    %43 = vector.load %arg14[%c0_35, %c0_36] : memref<1x1xf32, #tpu.memory_space<vmem>>, vector<1x1xf32>
    %44 = vector.broadcast %43 : vector<1x1xf32> to vector<1x128xf32>
    %45 = arith.addf %42, %44 : vector<1x128xf32>
    %cst_37 = arith.constant 0.000000e+00 : f32
    %46 = vector.broadcast %cst_37 : f32 to vector<1x128xf32>
    %47 = arith.subf %46, %45 : vector<1x128xf32>
    %48 = math.exp %47 : vector<1x128xf32>
    %cst_38 = arith.constant 1.000000e+00 : f32
    %49 = vector.broadcast %cst_38 : f32 to vector<1x128xf32>
    %50 = arith.addf %49, %48 : vector<1x128xf32>
    %cst_39 = arith.constant 1.000000e+00 : f32
    %51 = vector.broadcast %cst_39 : f32 to vector<1x128xf32>
    %52 = arith.divf %51, %50 : vector<1x128xf32>
    %c0_40 = arith.constant 0 : index
    %c0_41 = arith.constant 0 : index
    %53 = vector.load %arg15[%c0_40, %c0_41] : memref<1x128xf32, #tpu.memory_space<vmem>>, vector<1x128xf32>
    tpu.vector_store %arg15[%c0_40, %c0_41], %52 {strides = array<i32>} : memref<1x128xf32, #tpu.memory_space<vmem>>, vector<1x128xf32>,
    return
  }
  func.func @transform_0(%arg0: i32) -> (i32, i32) {
    %c0_i32 = arith.constant 0 : i32
    %c0_i32_0 = arith.constant 0 : i32
    return %c0_i32, %arg0 : i32, i32
  }
  func.func @transform_1(%arg0: i32) -> (i32, i32) {
    %c0_i32 = arith.constant 0 : i32
    %c0_i32_0 = arith.constant 0 : i32
    return %c0_i32, %arg0 : i32, i32
  }
  func.func @transform_2(%arg0: i32) -> (i32, i32) {
    %c0_i32 = arith.constant 0 : i32
    %c0_i32_0 = arith.constant 0 : i32
    %c0_i32_1 = arith.constant 0 : i32
    return %c0_i32, %c0_i32_0 : i32, i32
  }
  func.func @transform_3(%arg0: i32) -> (i32, i32) {
    %c0_i32 = arith.constant 0 : i32
    %c0_i32_0 = arith.constant 0 : i32
    %c0_i32_1 = arith.constant 0 : i32
    return %c0_i32, %c0_i32_0 : i32, i32
  }
  func.func @transform_4(%arg0: i32) -> (i32, i32) {
    %c0_i32 = arith.constant 0 : i32
    %c0_i32_0 = arith.constant 0 : i32
    %c0_i32_1 = arith.constant 0 : i32
    return %c0_i32, %c0_i32_0 : i32, i32
  }
  func.func @transform_5(%arg0: i32) -> (i32, i32) {
    %c0_i32 = arith.constant 0 : i32
    %c0_i32_0 = arith.constant 0 : i32
    %c0_i32_1 = arith.constant 0 : i32
    return %c0_i32, %c0_i32_0 : i32, i32
  }
  func.func @transform_6(%arg0: i32) -> (i32, i32) {
    %c0_i32 = arith.constant 0 : i32
    %c0_i32_0 = arith.constant 0 : i32
    %c0_i32_1 = arith.constant 0 : i32
    return %c0_i32, %c0_i32_0 : i32, i32
  }
  func.func @transform_7(%arg0: i32) -> (i32, i32) {
    %c0_i32 = arith.constant 0 : i32
    %c0_i32_0 = arith.constant 0 : i32
    %c0_i32_1 = arith.constant 0 : i32
    return %c0_i32, %c0_i32_0 : i32, i32
  }
  func.func @transform_8(%arg0: i32) -> (i32, i32) {
    %c0_i32 = arith.constant 0 : i32
    %c0_i32_0 = arith.constant 0 : i32
    %c0_i32_1 = arith.constant 0 : i32
    return %c0_i32, %c0_i32_0 : i32, i32
  }
  func.func @transform_9(%arg0: i32) -> (i32, i32) {
    %c0_i32 = arith.constant 0 : i32
    %c0_i32_0 = arith.constant 0 : i32
    %c0_i32_1 = arith.constant 0 : i32
    return %c0_i32, %c0_i32_0 : i32, i32
  }
  func.func @transform_10(%arg0: i32) -> (i32, i32) {
    %c0_i32 = arith.constant 0 : i32
    %c0_i32_0 = arith.constant 0 : i32
    %c0_i32_1 = arith.constant 0 : i32
    return %c0_i32, %c0_i32_0 : i32, i32
  }
  func.func @transform_11(%arg0: i32) -> (i32, i32) {
    %c0_i32 = arith.constant 0 : i32
    %c0_i32_0 = arith.constant 0 : i32
    %c0_i32_1 = arith.constant 0 : i32
    return %c0_i32, %c0_i32_0 : i32, i32
  }
  func.func @transform_12(%arg0: i32) -> (i32, i32) {
    %c0_i32 = arith.constant 0 : i32
    %c0_i32_0 = arith.constant 0 : i32
    %c0_i32_1 = arith.constant 0 : i32
    return %c0_i32, %c0_i32_0 : i32, i32
  }
  func.func @transform_13(%arg0: i32) -> (i32, i32) {
    %c0_i32 = arith.constant 0 : i32
    %c0_i32_0 = arith.constant 0 : i32
    %c0_i32_1 = arith.constant 0 : i32
    return %c0_i32, %c0_i32_0 : i32, i32
  }
  func.func @transform_14(%arg0: i32) -> (i32, i32) {
    %c0_i32 = arith.constant 0 : i32
    %c0_i32_0 = arith.constant 0 : i32
    return %c0_i32, %arg0 : i32, i32
  }
}

</mosaic_0001>

<bundles_post_ra>
// kernel: ncf_forward.1
= control target key start
LH: loop header
LB: loop body
LE: loop exit
PB: predicated region body
PF: predicated region fallthrough
CT: control target
= control target key end

     0   :  { %vm88_vm0 = vcmask 1043456   ;;  %vm69_vm1 = vcmask 97280   ;;  %v1018_v3 = vmov 0   ;;  %vm1019_vm2 = vmmov 1   ;;  %s1273_s0 = inlined_call_operand.vmem [shape: f32[24,128], index: 0, kind: input, shape index: {}]   ;;  %s1274_s1 = inlined_call_operand.vmem [shape: f32[24,128], index: 1, kind: input, shape index: {}]   ;;  %s1275_s3 = inlined_call_operand.vmem [shape: f32[48,12], index: 3, kind: input, shape index: {}]   ;;  %s1276_s13 = inlined_call_operand.<no memory space> [shape: f32[1,1], index: 13, kind: input, shape index: {}]   ;;  %s1277_s4 = inlined_call_operand.vmem [shape: f32[48,1], index: 4, kind: input, shape index: {}]   ;;  %s1278_s2 = inlined_call_operand.vmem [shape: f32[48,12], index: 2, kind: input, shape index: {}]   ;;  %s1279_s6 = inlined_call_operand.vmem [shape: f32[24,1], index: 6, kind: input, shape index: {}]   ;;  %s1280_s8 = inlined_call_operand.vmem [shape: f32[12,1], index: 8, kind: input, shape index: {}]   ;;  %s1281_s10 = inlined_call_operand.vmem [shape: f32[6,1], index: 10, kind: input, shape index: {}]   ;;  %s1282_s5 = inlined_call_operand.vmem [shape: f32[24,48], index: 5, kind: input, shape index: {}]   ;;  %s1283_s7 = inlined_call_operand.vmem [shape: f32[12,24], index: 7, kind: input, shape index: {}]   ;;  %s1284_s9 = inlined_call_operand.vmem [shape: f32[6,12], index: 9, kind: input, shape index: {}]   ;;  %s1285_s11 = inlined_call_operand.vmem [shape: f32[1,12], index: 11, kind: input, shape index: {}]   ;;  %s1286_s12 = inlined_call_operand.vmem [shape: f32[1,6], index: 12, kind: input, shape index: {}]   ;;  %s1287_s14 = inlined_call_operand.vmem [shape: f32[1,128], index: 14, kind: output, shape index: {}]  }
   0x1   :  { %v49_v0 = vld [vmem:[%s1273_s0] sm:$0xff]  ;;  %v50_v1 = vld [vmem:[%s1273_s0 + $0x8] sm:$0xff]  ;;  %v51_v2 = vld [vmem:[%s1273_s0 + $0x10] sm:$0xff]  ;;  %1012 = vset.pattern.permute.xlu0 %v1018_v3  ;;  %1013 = vset.pattern.permute.xlu1 %v1018_v3  ;;  %v19_v4 = vstv %s1276_s13  ;;  %v1020_v42 = vmov 0.0|0.0   ;;  %vm1021_vm4 = vmmov 0   ;;  %v1022_v43 = vmov 0.0  }
   0x2   :  { %v52_v5 = vld [vmem:[%s1274_s1] sm:$0xff]  ;;  %v53_v6 = vld [vmem:[%s1274_s1 + $0x8] sm:$0xff]  ;;  %v54_v7 = vld [vmem:[%s1274_s1 + $0x10] sm:$0xff]  ;;  %20 = vst [vmem:[#allocation2] sm:$0x1] %v19_v4  ;;  %v974_v12 = vpack.c.bf16 %v50_v1, %v49_v0  ;;  %980 = vmatprep.subr.bf16.mxu1 %v1020_v42  ;;  %931 = vmatprep.mubr.msk.f32.mxu1 %vm1021_vm4, %v1022_v43  ;;  %vm372_vm5 = vcmask 392192  }
   0x3   :  { %v55_v8 = vmul.f32 %v53_v6, %v50_v1  ;;  %v56_v9 = vmul.f32 %v54_v7, %v51_v2  ;;  %v968_v10 = vpack.c.bf16 %v53_v6, %v52_v5  ;;  %vm1120_vm3 = vmpackc.low %vm88_vm0, %vm1019_vm2  ;;  %v63_v13 = vld [vmem:[%s1275_s3] sm:$0xff]  ;;  %v64_v16 = vld [vmem:[%s1275_s3 + $0x8] sm:$0xff]  ;;  %vm479_vm6 = vcmask 195584  }
   0x4   :  { %897 = vmatprep.mubr.msk.f32.mxu0 %vm69_vm1, %v63_v13  ;;  %v65_v18 = vld [vmem:[%s1275_s3 + $0x10] sm:$0xff]  ;;  %v303_v19 = vld [vmem:[%s1277_s4] sm:$0xff]  ;;  %v304_v22 = vld [vmem:[%s1277_s4 + $0x8] sm:$0xff]  ;;  %vm653_vm7 = vcmask 1045504   ;;  %vm649_vm8 = vcmask 48128  }
   0x5   :  { %970 = vmatprep.subr.msk.bf16.mxu0 %vm1120_vm3, %v968_v10  ;;  %v729_v14 = vrot.slane %v55_v8, 4  ;;  %v730_v15 = vrot.slane %v56_v9, 4  ;;  %311 = vperm.xlu0 %1012, %v303_v19   ;;  %v305_v21 = vld [vmem:[%s1277_s4 + $0x10] sm:$0xff]  ;;  %v66_v23 = vld [vmem:[%s1275_s3 + $0x18] sm:$0xff]  ;;  %v67_v25 = vld [vmem:[%s1275_s3 + $0x20] sm:$0xff] }
   0x6   :  { %973 = vmatpush3.bf16.msk.msra.mxu0 %vm1120_vm3, %v968_v10  ;;  %321 = vperm.xlu1 %1013, %v305_v21   ;;  %v306_v24 = vld [vmem:[%s1277_s4 + $0x18] sm:$0xff]  ;;  %v307_v26 = vld [vmem:[%s1277_s4 + $0x20] sm:$0xff]  ;;  %v68_v27 = vld [vmem:[%s1275_s3 + $0x28] sm:$0xff] }
   0x7   :  { %v731_v17 = vsel %vm88_vm0, %v729_v14, %v730_v15  ;;  %976 = vmatprep.subr.msk.bf16.mxu0 %vm1120_vm3, %v974_v12  ;;  %v308_v28 = vld [vmem:[%s1277_s4 + $0x28] sm:$0xff]  ;;  %v57_v29 = vld [vmem:[%s1278_s2] sm:$0xff]  ;;  %v59_v33 = vld [vmem:[%s1278_s2 + $0x10] sm:$0xff] }
   0x8   :  { %v1144_v20 = vpack.c.bf16 %v730_v15, %v731_v17  ;;  %v354_v30 = vld [vmem:[%s1279_s6] sm:$0xff]  ;;  %v58_v31 = vld [vmem:[%s1278_s2 + $0x8] sm:$0xff]  ;;  %v356_v34 = vld [vmem:[%s1279_s6 + $0x10] sm:$0xff] }
   0x9   :  { %898 = vmatmul.mubr.msk.f32.vlgmr.msra.gmra.mrb[0].mxu0 %vm69_vm1, %v64_v16  ;;  %316 = vperm.xlu0 %1012, %v304_v22   ;;  %v355_v32 = vld [vmem:[%s1279_s6 + $0x8] sm:$0xff]  ;;  %v60_v35 = vld [vmem:[%s1278_s2 + $0x18] sm:$0xff]  ;;  %v467_v36 = vld [vmem:[%s1280_s8] sm:$0xff] }
   0xa   :  { %900 = vmatprep.mubr.msk.f32.mxu0 %vm69_vm1, %v65_v18  ;;  %979 = vmatpush3.bf16.msk.msra.mxu0 %vm1120_vm3, %v974_v12  ;;  %v61_v37 = vld [vmem:[%s1278_s2 + $0x20] sm:$0xff]  ;;  %v468_v38 = vld [vmem:[%s1280_s8 + $0x8] sm:$0xf]  ;;  %v353_v9 = vld [vmem:[%s1282_s5 + $0x10] sm:$0xff] }
   0xb   :  { %326 = vperm.xlu1 %1013, %v306_v24   ;;  %v62_v39 = vld [vmem:[%s1278_s2 + $0x28] sm:$0xff]  ;;  %v564_v40 = vld [vmem:[%s1281_s10] sm:$0x3f]  ;;  %993 = vmatprep.subr.bf16.mxu0 %v1020_v42 }
   0xc   :  { %v808_v41 = vld [vmem:[#allocation2] sm:$0x1]  ;;  %v352_v8 = vld [vmem:[%s1282_s5 + $0x8] sm:$0xff] }
   0xd   :  { %901 = vmatmul.mubr.msk.f32.gmra.mrb[2].mxu0 %vm69_vm1, %v66_v23  ;;  %331 = vperm.xlu0 %1012, %v307_v26   ;;  %v351_v7 = vld [vmem:[%s1282_s5] sm:$0xff] }
   0xe   :  { %903 = vmatprep.mubr.msk.f32.mxu0 %vm69_vm1, %v67_v25  ;;  %v465_v10 = vld [vmem:[%s1283_s7] sm:$0xff] }
   0xf   :  { %336 = vperm.xlu1 %1013, %v308_v28   ;;  %v648_v11 = vld [vmem:[%s1286_s12] sm:$0x1] }
  0x11   :  { %904 = vmatmul.mubr.msk.f32.gmra.mrb[4].mxu0 %vm69_vm1, %v68_v27  ;;  %359 = vperm.xlu0 %1012, %v354_v30  }
  0x12   :  { %910 = vmatprep.mubr.msk.f32.mxu0 %vm69_vm1, %v57_v29  ;;  %v466_v29 = vld [vmem:[%s1283_s7 + $0x8] sm:$0xf] }
  0x13   :  { %364 = vperm.xlu1 %1013, %v355_v32  }
  0x15   :  { %911 = vmatmul.mubr.msk.f32.vlgmr.msra.gmra.mrb[0].mxu0 %vm69_vm1, %v58_v31  ;;  %369 = vperm.xlu0 %1012, %v356_v34  }
  0x16   :  { %913 = vmatprep.mubr.msk.f32.mxu0 %vm69_vm1, %v59_v33 }
  0x17   :  { %471 = vperm.xlu1 %1013, %v467_v36  }
  0x19   :  { %914 = vmatmul.mubr.msk.f32.gmra.mrb[2].mxu0 %vm69_vm1, %v60_v35  ;;  %476 = vperm.xlu0 %1012, %v468_v38  }
  0x1a   :  { %916 = vmatprep.mubr.msk.f32.mxu0 %vm69_vm1, %v61_v37 }
  0x1b   :  { %567 = vperm.xlu1 %1013, %v564_v40   ;;  %v647_v40 = vld [vmem:[%s1285_s11] sm:$0x1] }
  0x1d   :  { %917 = vmatmul.mubr.msk.f32.gmra.mrb[4].mxu0 %vm69_vm1, %v62_v39  ;;  %811 = vperm.xlu0 %1012, %v808_v41   ;;  %v563_v39 = vld [vmem:[%s1284_s9] sm:$0x3f] }
  0x1e   :  { %953 = vmatprep.mubr.msk.f32.mxu0 %vm1021_vm4, %v1022_v43 }
  0x84   :  { %v312_v44 = vpop.permute.xlu0 %311 }
  0x85   :  { %v322_v45 = vpop.permute.xlu1 %321 }
  0x88   :  { %v317_v46 = vpop.permute.xlu0 %316 }
  0x8a   :  { %v327_v50 = vpop.permute.xlu1 %326 }
  0x8c   :  { %v332_v63 = vpop.permute.xlu0 %331 }
  0x8e   :  { %v337_v60 = vpop.permute.xlu1 %336 }
  0x90   :  { %v360_v14 = vpop.permute.xlu0 %359 }
  0x92   :  { %v365_v16 = vpop.permute.xlu1 %364 }
  0x94   :  { %v370_v23 = vpop.permute.xlu0 %369 }
  0x96   :  { %v472_v32 = vpop.permute.xlu1 %471 }
  0x98   :  { %v477_v30 = vpop.permute.xlu0 %476 }
  0x9a   :  { %v568_v41 = vpop.permute.xlu1 %567 }
  0xe8   :  { %v912_v47 = vpop.f32.mrb[0].mxu0 }
  0xe9   :  { %v340_v48 = vadd.f32 %v912_v47, %v317_v46  ;;  %v274_v49 = vpop.f32.mrb[1].mxu0  ;;  %v814_v47 = vlaneseq }
  0xea   :  { %v339_v51 = vadd.f32 %v312_v44, %v274_v49 }
  0xeb   :  { %v346_v52 = vmax.f32 %v340_v48, 0.0  ;;  %v815_v48 = vshrl.u32 %v814_v47, 7 }
  0xec   :  { %v345_v53 = vmax.f32 %v339_v51, 0.0  ;;  %v915_v54 = vpop.f32.mrb[2].mxu0 }
  0xed   :  { %v342_v55 = vadd.f32 %v915_v54, %v327_v50  ;;  %v284_v56 = vpop.f32.mrb[3].mxu0  ;;  %v816_v49 = vsub.s32 0, %v815_v48  ;;  %v812_v50 = vpop.permute.xlu0 %811 }
  0xee   :  { %v341_v57 = vadd.f32 %v322_v45, %v284_v56  ;;  %v981_v58 = vpack.c.bf16 %v346_v52, %v345_v53 }
  0xef   :  { %v348_v59 = vmax.f32 %v342_v55, 0.0  ;;  %v817_v52 = vrot.slane %v812_v50, %v816_v49 }
  0xf0   :  { %v347_v61 = vmax.f32 %v341_v57, 0.0  ;;  %v918_v62 = vpop.f32.mrb[4].mxu0  ;;  %982 = vmatpush3.bf16.msra.mxu1 %v981_v58 }
  0xf1   :  { %v344_v0 = vadd.f32 %v918_v62, %v337_v60  ;;  %v294_v1 = vpop.f32.mrb[5].mxu0  ;;  %983 = vmatprep.subr.bf16.mxu1 %v1020_v42 }
  0xf2   :  { %v984_v2 = vpack.c.bf16 %v348_v59, %v347_v61  ;;  %v343_v3 = vadd.f32 %v332_v63, %v294_v1 }
  0xf3   :  { %v350_v4 = vmax.f32 %v344_v0, 0.0 }
  0xf4   :  { %v349_v5 = vmax.f32 %v343_v3, 0.0  ;;  %985 = vmatpush3.bf16.msra.mxu1 %v984_v2 }
  0xf5   :  { %986 = vmatprep.subr.bf16.mxu1 %v1020_v42 }
  0xf6   :  { %v987_v6 = vpack.c.bf16 %v350_v4, %v349_v5 }
  0xf8   :  { %988 = vmatpush3.bf16.msra.mxu1 %v987_v6 }
  0xfb   :  { %932 = vmatmul.mubr.msk.f32.vlgmr.msra.gmra.mrb[0].mxu1 %vm372_vm5, %v351_v7 }
  0xfc   :  { %934 = vmatprep.mubr.msk.f32.mxu1 %vm1021_vm4, %v1022_v43 }
  0xff   :  { %935 = vmatmul.mubr.msk.f32.gmra.mrb[2].mxu1 %vm372_vm5, %v352_v8 }
 0x100   :  { %937 = vmatprep.mubr.msk.f32.mxu1 %vm1021_vm4, %v1022_v43 }
 0x103   :  { %938 = vmatmul.mubr.msk.f32.gmra.mrb[4].mxu1 %vm372_vm5, %v353_v9 }
 0x104   :  { %946 = vmatprep.mubr.msk.f32.mxu1 %vm479_vm6, %v465_v10 }
 0x1ce   :  { %v448_v12 = vpop.f32.mrb[0].mxu1 }
 0x1cf   :  { %v933_v13 = vpop.f32.mrb[1].mxu1  ;;  %v449_v15 = vadd.f32 %v448_v12, %v360_v14 }
 0x1d1   :  { %v462_v21 = vmax.f32 %v449_v15, 0.0 }
 0x1d2   :  { %v453_v17 = vpop.f32.mrb[2].mxu1 }
 0x1d3   :  { %v454_v18 = vadd.f32 %v453_v17, %v365_v16  ;;  %v936_v19 = vpop.f32.mrb[3].mxu1 }
 0x1d5   :  { %v463_v22 = vmax.f32 %v454_v18, 0.0 }
 0x1d6   :  { %v458_v24 = vpop.f32.mrb[4].mxu1 }
 0x1d7   :  { %v989_v25 = vpack.c.bf16 %v463_v22, %v462_v21  ;;  %v459_v26 = vadd.f32 %v458_v24, %v370_v23  ;;  %v939_v27 = vpop.f32.mrb[5].mxu1 }
 0x1d9   :  { %v464_v28 = vmax.f32 %v459_v26, 0.0  ;;  %990 = vmatprep.subr.bf16.mxu1 %v989_v25 }
 0x1da   :  { %992 = vmatpush3.bf16.msra.mxu1 %v989_v25 }
 0x1db   :  { %944 = vmatprep.subr.mxu1 %v464_v28 }
 0x1de   :  { %945 = vmatpush3.msra.mxu1 %v464_v28 }
 0x1df   :  { %947 = vmatmul.mubr.msk.f32.vlgmr.msra.gmra.mrb[6].mxu1 %vm479_vm6, %v466_v29  ;;  %956 = vmatprep.subr.mxu1 %v1022_v43 }
 0x1e0   :  { %958 = vmatprep.mubr.msk.f32.mxu1 %vm1021_vm4, %v1022_v43 }
 0x2b2   :  { %v948_v31 = vpop.f32.mrb[6].mxu1 }
 0x2b3   :  { %v558_v33 = vadd.f32 %v948_v31, %v477_v30  ;;  %v552_v34 = vpop.f32.mrb[7].mxu1 }
 0x2b4   :  { %v553_v35 = vadd.f32 %v552_v34, %v472_v32 }
 0x2b5   :  { %v562_v36 = vmax.f32 %v558_v33, 0.0 }
 0x2b6   :  { %v561_v37 = vmax.f32 %v553_v35, 0.0 }
 0x2b8   :  { %v994_v38 = vpack.c.bf16 %v562_v36, %v561_v37 }
 0x2ba   :  { %996 = vmatpush3.bf16.msk.msra.mxu0 %vm1120_vm3, %v994_v38 }
 0x2bb   :  { %997 = vmatprep.subr.bf16.mxu0 %v1020_v42 }
 0x2bd   :  { %954 = vmatmul.mubr.msk.f32.vlgmr.msra.gmra.mrb[6].mxu0 %vm69_vm1, %v563_v39 }
 0x2be   :  { %1000 = vmatpush3.bf16.msk.msra.mxu0 %vm1120_vm3, %v1144_v20  ;;  %965 = vmatprep.mubr.msk.f32.mxu0 %vm1021_vm4, %v1022_v43 }
 0x2c1   :  { %966 = vmatmul.mubr.msk.f32.vlgmr.msra.gmra.mrb[8].mxu0 %vm69_vm1, %v647_v40 }
 0x390   :  { %v642_v44 = vpop.f32.mrb[6].mxu0 }
 0x391   :  { %v643_v45 = vadd.f32 %v642_v44, %v568_v41  ;;  %v955_v46 = vpop.f32.mrb[7].mxu0 }
 0x393   :  { %v646_v42 = vmax.f32 %v643_v45, 0.0 }
 0x394   :  { %v804_v20 = vpop.f32.mrb[8].mxu0 }
 0x395   :  { %957 = vmatpush3.msk.msra.mxu1 %vm653_vm7, %v646_v42  ;;  %v967_v43 = vpop.f32.mrb[9].mxu0 }
 0x396   :  { %959 = vmatmul.mubr.msk.f32.vlgmr.msra.gmra.mrb[8].mxu1 %vm649_vm8, %v648_v11 }
 0x469   :  { %v723_v51 = vpop.f32.mrb[8].mxu1 }
 0x46a   :  { %v805_v53 = vadd.f32 %v804_v20, %v723_v51  ;;  %v960_v54 = vpop.f32.mrb[9].mxu1 }
 0x46c   :  { %v818_v55 = vadd.f32 %v817_v52, %v805_v53 }
 0x46e   :  { %v819_v56 = vsub.f32 0.0, %v818_v55 }
 0x470   :  { %v820_v57 = vmul.f32 1.442695, %v819_v56 }
 0x472   :  { %1014 = vpow2.f32 %v820_v57 }
 0x47c   :  { %v1015_v58 = vpop.eup %1014 }
 0x47d   :  { %v822_v59 = vadd.f32 1.0, %v1015_v58 }
 0x47f   :  { %1016 = vrcp.f32 %v822_v59 }
 0x489   :  { %v1017_v60 = vpop.eup %1016 }
 0x48a   :  { %825 = vst [vmem:[%s1287_s14] sm:$0x1] %v1017_v60 }

</bundles_post_ra>
